<compile_context>
chip_gen: v6e
topology: v6e:2x2x1
jax: 0.10.0
libtpu: 0.0.40
codegen_flags: <defaults>
</compile_context>

<pallas_src>
import functools

import jax
import jax.numpy as jnp
from jax import lax
from jax.experimental import pallas as pl
from jax.experimental.pallas import tpu as pltpu


def _round_up(x, m):
    return -(-x // m) * m


def _center_intersection_kernel(emb_ref, w1_ref, b1_ref, w2_ref, b2_ref,
                                out_ref, xpad_ref, *, tb, n, n_pad, d, mm_dtype):
    """One grid step: tb query groups of n conjunct embeddings each."""
    emb = emb_ref[...].astype(jnp.float32)                # (tb, n, d)

    if n == n_pad:
        x3 = emb                                          # already sublane-aligned
    else:
        # Sublane-align the conjunct axis inside VMEM (no HBM padding pass).
        # Pad rows are zeroed every step so they contribute exactly 0 to the
        # attention-weighted sum (and stay well-defined under megacore).
        xpad_ref[:, n:, :] = jnp.zeros((tb, n_pad - n, d), jnp.float32)
        xpad_ref[:, :n, :] = emb
        x3 = xpad_ref[...]                                # (tb, n_pad, d)

    x2d = x3.reshape(tb * n_pad, d)                       # tile-aligned reshape

    # Two dense layers on the MXU: bf16 operands, f32 accumulation.  Weights
    # arrive pre-transposed to (in, out), so this is a plain contraction.
    h = jnp.dot(x2d.astype(mm_dtype), w1_ref[...],
                preferred_element_type=jnp.float32)
    h = jnp.maximum(h + b1_ref[...], 0.0)                 # (tb*n_pad, d) f32
    logits = jnp.dot(h.astype(mm_dtype), w2_ref[...],
                     preferred_element_type=jnp.float32)
    logits = logits + b2_ref[...]                         # (tb*n_pad, d) f32

    logits3 = logits.reshape(tb, n_pad, d)                # (tb, n_pad, d)
    if n != n_pad:
        # Additive mask (one vreg, built once per step): pad rows get -1e30 so
        # exp underflows to exactly 0 and they take no softmax mass.
        row = lax.broadcasted_iota(jnp.int32, (1, n_pad, d), 1)
        logits3 = logits3 + jnp.where(row < n, jnp.float32(0.0),
                                      jnp.float32(-1e30))

    # Per-group softmax over the conjunct axis (all f32, exact denominator).
    m = jnp.max(logits3, axis=1, keepdims=True)           # (tb, 1, d)
    e = jnp.exp(logits3 - m)
    att = e / jnp.sum(e, axis=1, keepdims=True)           # (tb, n_pad, d)

    # Attention-weighted sum over conjuncts -> lane-dense (tb, d) output.
    out_ref[...] = jnp.sum(att * x3, axis=1).astype(out_ref.dtype)


def center_intersection(embeddings, w1, b1, w2, b2, *, block_b=256,
                        use_bf16_matmul=True):
    """query2box CenterIntersection forward.

    embeddings: (N, D) or (B, N, D), float32 or bfloat16
    w1, w2:     (D, D) in PyTorch (out, in) layout
    b1, b2:     (D,)
    returns:    (D,) or (B, D) float32
    """
    emb = jnp.asarray(embeddings)
    if emb.dtype not in (jnp.float32, jnp.bfloat16):
        emb = emb.astype(jnp.float32)
    single = emb.ndim == 2
    if single:
        emb = emb[None]
    B, N, D = emb.shape

    mm_dtype = jnp.bfloat16 if use_bf16_matmul else jnp.float32
    # One-time tiny transforms (2 * D^2): PyTorch (out, in) -> (in, out) so the
    # kernel needs no per-step transpose; cast weights to the MXU dtype.
    w1t = jnp.asarray(w1, jnp.float32).T.astype(mm_dtype)
    w2t = jnp.asarray(w2, jnp.float32).T.astype(mm_dtype)
    b1r = jnp.asarray(b1, jnp.float32).reshape(1, D)
    b2r = jnp.asarray(b2, jnp.float32).reshape(1, D)

    # Conjunct axis is aligned to the f32 sublane multiple inside the kernel.
    n_pad = max(8, _round_up(N, 8))

    # Batch tile: big tiles amortize the ~0.35us/step overhead and keep the MXU
    # fed (tb*n_pad rows per matmul); keep grid length >= 2 when B >= 16 so the
    # "parallel" axis can shard across both TensorCores on v7x.
    tb = min(block_b, B)
    if B >= 16:
        tb = min(tb, max(8, _round_up(-(-B // 2), 8)))
    if tb < B:
        tb = max(8, (tb // 8) * 8)      # output-block sublane alignment
    grid = (pl.cdiv(B, tb),)

    kernel = functools.partial(
        _center_intersection_kernel,
        tb=tb, n=N, n_pad=n_pad, d=D, mm_dtype=mm_dtype)

    # VMEM @ tb=256, D=128: ~2 MiB double-buffered emb blocks + 1 MiB scratch
    # + resident weights (64 KiB bf16) -- far below every generation's scoped
    # default.  NOTE(prod): for D in the thousands, re-derive tiling against
    # the 32 MiB scoped default / 64 MiB v7x physical VMEM and raise
    # vmem_limit_bytes (or add a weight-column tiling axis).
    out = pl.pallas_call(
        kernel,
        out_shape=jax.ShapeDtypeStruct((B, D), jnp.float32),
        grid_spec=pltpu.PrefetchScalarGridSpec(
            num_scalar_prefetch=0,
            grid=grid,
            in_specs=[
                # tb query groups per step; conjunct axis left unpadded in HBM.
                pl.BlockSpec((tb, N, D), lambda b: (b, 0, 0)),
                # Weights / biases: constant index_map -> DMA'd once, resident.
                pl.BlockSpec((D, D), lambda b: (0, 0)),
                pl.BlockSpec((1, D), lambda b: (0, 0)),
                pl.BlockSpec((D, D), lambda b: (0, 0)),
                pl.BlockSpec((1, D), lambda b: (0, 0)),
            ],
            out_specs=pl.BlockSpec((tb, D), lambda b: (b, 0)),
            scratch_shapes=[pltpu.VMEM((tb, n_pad, D), jnp.float32)],
        ),
        compiler_params=pltpu.CompilerParams(
            dimension_semantics=("parallel",)),
    )(emb, w1t, b1r, w2t, b2r)

    return out[0] if single else out


def _xavier_uniform(key, shape):
    fan_in, fan_out = shape[1], shape[0]
    bound = (6.0 / (fan_in + fan_out)) ** 0.5
    return jax.random.uniform(key, shape, jnp.float32, -bound, bound)


def _linear_bias(key, fan_in, dim):
    bound = 1.0 / (fan_in ** 0.5)
    return jax.random.uniform(key, (dim,), jnp.float32, -bound, bound)


def _reference(embeddings, w1, b1, w2, b2):
    h = jnp.maximum(embeddings @ w1.T + b1, 0.0)
    logits = h @ w2.T + b2
    att = jax.nn.softmax(logits, axis=0)
    return jnp.sum(att * embeddings, axis=0)


if __name__ == "__main__":
    B, N, DIM = 32, 5, 128   # B query groups, N conjuncts each, hidden dim D

    key = jax.random.PRNGKey(0)
    k_emb, k_w1, k_b1, k_w2, k_b2 = jax.random.split(key, 5)

    embeddings = jax.random.normal(k_emb, (B, N, DIM), jnp.float32)
    w1 = _xavier_uniform(k_w1, (DIM, DIM))
    b1 = _linear_bias(k_b1, DIM, DIM)
    w2 = _xavier_uniform(k_w2, (DIM, DIM))
    b2 = _linear_bias(k_b2, DIM, DIM)

    ref = jax.vmap(lambda e: _reference(e, w1, b1, w2, b2))(embeddings)

    # Default path: bf16 MXU operands, f32 softmax / accumulation (relaxed tol).
    out = jax.block_until_ready(center_intersection(embeddings, w1, b1, w2, b2))
    assert out.shape == (B, DIM)
    assert jnp.allclose(out, ref, atol=5e-2, rtol=5e-2), \
        float(jnp.max(jnp.abs(out - ref)))

    # Full-f32 matmul path: near-exact against the PyTorch-equivalent reference.
    out32 = jax.block_until_ready(
        center_intersection(embeddings, w1, b1, w2, b2, use_bf16_matmul=False))
    assert jnp.allclose(out32, ref, atol=5e-3, rtol=5e-3), \
        float(jnp.max(jnp.abs(out32 - ref)))

    # Single-query path (the module's native (N, D) -> (D,) signature).
    single = jax.block_until_ready(
        center_intersection(embeddings[0], w1, b1, w2, b2))
    assert single.shape == (DIM,)
    assert jnp.allclose(single, ref[0], atol=5e-2, rtol=5e-2)

    print("KERNEL_OK")
</pallas_src>

<mosaic_0001>
module attributes {stable_mosaic.version = 11 : i64} {
  func.func @_center_intersection_kernel(%arg0: i32, %arg1: memref<16x5x128xf32, #tpu.memory_space<vmem>>, %arg2: memref<128x128xbf16, #tpu.memory_space<vmem>>, %arg3: memref<1x128xf32, #tpu.memory_space<vmem>>, %arg4: memref<128x128xbf16, #tpu.memory_space<vmem>>, %arg5: memref<1x128xf32, #tpu.memory_space<vmem>>, %arg6: memref<16x128xf32, #tpu.memory_space<vmem>>, %arg7: memref<16x8x128xf32, #tpu.memory_space<vmem>>) attributes {dimension_semantics = [#tpu.dimension_semantics<parallel>], iteration_bounds = array<i64: 2>, scalar_prefetch = 0 : i64, scratch_operands = 1 : i64, tpu.core_type = #tpu.core_type<tc>, window_params = [{transform_indices = @transform_0, window_bounds = array<i64: 16, 5, 128>}, {pipeline_mode = #tpu.pipeline_mode<synchronous>, transform_indices = @transform_1, window_bounds = array<i64: 128, 128>}, {pipeline_mode = #tpu.pipeline_mode<synchronous>, transform_indices = @transform_2, window_bounds = array<i64: 1, 128>}, {pipeline_mode = #tpu.pipeline_mode<synchronous>, transform_indices = @transform_3, window_bounds = array<i64: 128, 128>}, {pipeline_mode = #tpu.pipeline_mode<synchronous>, transform_indices = @transform_4, window_bounds = array<i64: 1, 128>}, {transform_indices = @transform_5, window_bounds = array<i64: 16, 128>}]} {
    %c0 = arith.constant 0 : index
    %c0_0 = arith.constant 0 : index
    %c0_1 = arith.constant 0 : index
    %0 = vector.load %arg1[%c0, %c0_0, %c0_1] : memref<16x5x128xf32, #tpu.memory_space<vmem>>, vector<16x5x128xf32>
    %cst = arith.constant 0.000000e+00 : f32
    %1 = vector.broadcast %cst : f32 to vector<16x3x128xf32>
    %c0_2 = arith.constant 0 : index
    %c5 = arith.constant 5 : index
    %c0_3 = arith.constant 0 : index
    %2 = vector.load %arg7[%c0_2, %c5, %c0_3] : memref<16x8x128xf32, #tpu.memory_space<vmem>>, vector<16x3x128xf32>
    tpu.vector_store %arg7[%c0_2, %c5, %c0_3], %1 {strides = array<i32>} : memref<16x8x128xf32, #tpu.memory_space<vmem>>, vector<16x3x128xf32>,
    %c0_4 = arith.constant 0 : index
    %c0_5 = arith.constant 0 : index
    %c0_6 = arith.constant 0 : index
    %3 = vector.load %arg7[%c0_4, %c0_5, %c0_6] : memref<16x8x128xf32, #tpu.memory_space<vmem>>, vector<16x5x128xf32>
    tpu.vector_store %arg7[%c0_4, %c0_5, %c0_6], %0 {strides = array<i32>} : memref<16x8x128xf32, #tpu.memory_space<vmem>>, vector<16x5x128xf32>,
    %c0_7 = arith.constant 0 : index
    %c0_8 = arith.constant 0 : index
    %c0_9 = arith.constant 0 : index
    %4 = vector.load %arg7[%c0_7, %c0_8, %c0_9] : memref<16x8x128xf32, #tpu.memory_space<vmem>>, vector<16x8x128xf32>
    %5 = vector.shape_cast %4 : vector<16x8x128xf32> to vector<128x128xf32>
    %6 = arith.truncf %5 : vector<128x128xf32> to vector<128x128xbf16>
    %c0_10 = arith.constant 0 : index
    %c0_11 = arith.constant 0 : index
    %7 = vector.load %arg2[%c0_10, %c0_11] : memref<128x128xbf16, #tpu.memory_space<vmem>>, vector<128x128xbf16>
    %cst_12 = arith.constant dense<0.000000e+00> : vector<128x128xf32>
    %8 = tpu.matmul %6, %7, %cst_12 {dimension_numbers = #tpu.dot_dimension_numbers<[1], [0], [0], [1], [0, 0, 1, 1], [], []>} : vector<128x128xbf16>, vector<128x128xbf16>, vector<128x128xf32> -> vector<128x128xf32>
    %c0_13 = arith.constant 0 : index
    %c0_14 = arith.constant 0 : index
    %9 = vector.load %arg3[%c0_13, %c0_14] : memref<1x128xf32, #tpu.memory_space<vmem>>, vector<1x128xf32>
    %10 = vector.broadcast %9 : vector<1x128xf32> to vector<128x128xf32>
    %11 = arith.addf %8, %10 : vector<128x128xf32>
    %cst_15 = arith.constant 0.000000e+00 : f32
    %12 = vector.broadcast %cst_15 : f32 to vector<128x128xf32>
    %13 = arith.maximumf %11, %12 : vector<128x128xf32>
    %14 = arith.truncf %13 : vector<128x128xf32> to vector<128x128xbf16>
    %c0_16 = arith.constant 0 : index
    %c0_17 = arith.constant 0 : index
    %15 = vector.load %arg4[%c0_16, %c0_17] : memref<128x128xbf16, #tpu.memory_space<vmem>>, vector<128x128xbf16>
    %cst_18 = arith.constant dense<0.000000e+00> : vector<128x128xf32>
    %16 = tpu.matmul %14, %15, %cst_18 {dimension_numbers = #tpu.dot_dimension_numbers<[1], [0], [0], [1], [0, 0, 1, 1], [], []>} : vector<128x128xbf16>, vector<128x128xbf16>, vector<128x128xf32> -> vector<128x128xf32>
    %c0_19 = arith.constant 0 : index
    %c0_20 = arith.constant 0 : index
    %17 = vector.load %arg5[%c0_19, %c0_20] : memref<1x128xf32, #tpu.memory_space<vmem>>, vector<1x128xf32>
    %18 = vector.broadcast %17 : vector<1x128xf32> to vector<128x128xf32>
    %19 = arith.addf %16, %18 : vector<128x128xf32>
    %20 = vector.shape_cast %19 : vector<128x128xf32> to vector<16x8x128xf32>
    %21 = tpu.iota {dimensions = array<i32: 1>} : vector<1x8x128xi32>
    %c5_i32 = arith.constant 5 : i32
    %22 = vector.broadcast %c5_i32 : i32 to vector<1x8x128xi32>
    %23 = arith.cmpi slt, %21, %22 : vector<1x8x128xi32>
    %cst_21 = arith.constant 0.000000e+00 : f32
    %cst_22 = arith.constant -1.000000e+30 : f32
    %24 = vector.broadcast %cst_21 : f32 to vector<1x8x128xf32>
    %25 = vector.broadcast %cst_22 : f32 to vector<1x8x128xf32>
    %26 = arith.select %23, %24, %25 : vector<1x8x128xi1>, vector<1x8x128xf32>
    %27 = vector.broadcast %26 : vector<1x8x128xf32> to vector<16x8x128xf32>
    %28 = arith.addf %20, %27 : vector<16x8x128xf32>
    %cst_23 = arith.constant dense<0xFF800000> : vector<16x128xf32>
    %29 = vector.multi_reduction <maximumf>, %28, %cst_23 [1] : vector<16x8x128xf32> to vector<16x128xf32>
    %30 = vector.shape_cast %29 : vector<16x128xf32> to vector<16x1x128xf32>
    %31 = vector.broadcast %30 : vector<16x1x128xf32> to vector<16x8x128xf32>
    %32 = arith.subf %28, %31 : vector<16x8x128xf32>
    %33 = math.exp %32 : vector<16x8x128xf32>
    %cst_24 = arith.constant dense<0.000000e+00> : vector<16x128xf32>
    %34 = vector.multi_reduction <add>, %33, %cst_24 [1] : vector<16x8x128xf32> to vector<16x128xf32>
    %35 = vector.shape_cast %34 : vector<16x128xf32> to vector<16x1x128xf32>
    %36 = vector.broadcast %35 : vector<16x1x128xf32> to vector<16x8x128xf32>
    %37 = arith.divf %33, %36 : vector<16x8x128xf32>
    %38 = arith.mulf %37, %4 : vector<16x8x128xf32>
    %cst_25 = arith.constant dense<0.000000e+00> : vector<16x128xf32>
    %39 = vector.multi_reduction <add>, %38, %cst_25 [1] : vector<16x8x128xf32> to vector<16x128xf32>
    %c0_26 = arith.constant 0 : index
    %c0_27 = arith.constant 0 : index
    %40 = vector.load %arg6[%c0_26, %c0_27] : memref<16x128xf32, #tpu.memory_space<vmem>>, vector<16x128xf32>
    tpu.vector_store %arg6[%c0_26, %c0_27], %39 {strides = array<i32>} : memref<16x128xf32, #tpu.memory_space<vmem>>, vector<16x128xf32>,
    return
  }
  func.func @transform_0(%arg0: i32) -> (i32, i32, i32) {
    %c0_i32 = arith.constant 0 : i32
    %c0_i32_0 = arith.constant 0 : i32
    %c0_i32_1 = arith.constant 0 : i32
    return %arg0, %c0_i32, %c0_i32_0 : i32, i32, i32
  }
  func.func @transform_1(%arg0: i32) -> (i32, i32) {
    %c0_i32 = arith.constant 0 : i32
    %c0_i32_0 = arith.constant 0 : i32
    %c0_i32_1 = arith.constant 0 : i32
    return %c0_i32, %c0_i32_0 : i32, i32
  }
  func.func @transform_2(%arg0: i32) -> (i32, i32) {
    %c0_i32 = arith.constant 0 : i32
    %c0_i32_0 = arith.constant 0 : i32
    %c0_i32_1 = arith.constant 0 : i32
    return %c0_i32, %c0_i32_0 : i32, i32
  }
  func.func @transform_3(%arg0: i32) -> (i32, i32) {
    %c0_i32 = arith.constant 0 : i32
    %c0_i32_0 = arith.constant 0 : i32
    %c0_i32_1 = arith.constant 0 : i32
    return %c0_i32, %c0_i32_0 : i32, i32
  }
  func.func @transform_4(%arg0: i32) -> (i32, i32) {
    %c0_i32 = arith.constant 0 : i32
    %c0_i32_0 = arith.constant 0 : i32
    %c0_i32_1 = arith.constant 0 : i32
    return %c0_i32, %c0_i32_0 : i32, i32
  }
  func.func @transform_5(%arg0: i32) -> (i32, i32) {
    %c0_i32 = arith.constant 0 : i32
    %c0_i32_0 = arith.constant 0 : i32
    return %arg0, %c0_i32 : i32, i32
  }
}

</mosaic_0001>

<bundles_post_ra>
// kernel: tpu_custom_call.1
= control target key start
LH: loop header
LB: loop body
LE: loop exit
PB: predicated region body
PF: predicated region fallthrough
CT: control target
= control target key end

     0   :  { %10 = vsyncpa [#allocation4], 0  ;;  %s1956_s0 = inlined_call_operand.vmem [shape: f32[32,5,128], index: 0, kind: input, shape index: {}]   ;;  %s1957_s1 = inlined_call_operand.vmem [shape: bf16[128,128], index: 1, kind: input, shape index: {}]   ;;  %s1958_s2 = inlined_call_operand.vmem [shape: f32[1,128], index: 2, kind: input, shape index: {}]   ;;  %s1959_s3 = inlined_call_operand.vmem [shape: bf16[128,128], index: 3, kind: input, shape index: {}]   ;;  %s1960_s4 = inlined_call_operand.vmem [shape: f32[1,128], index: 4, kind: input, shape index: {}]   ;;  %s1961_s5 = inlined_call_operand.hbm [shape: f32[32,128], index: 5, kind: output, shape index: {}]  }
   0x1   :  { %12 = vsyncpa [#allocation4 + $0x1], 0  ;;  %s1531_s18 = smov 0   ;;  %s1533_s19 = smov 0  }
   0x2   :  { %s1535_s20 = smov 0   ;;  %s1537_s21 = smov 0  }
   0x3 LB: > { %s1552_s22 = sadd.s32 4294967295, %s1494_s21   ;;  %s1180_s23 = sadd.s32 4294967294, %s1494_s21   ;;  %s1494_s21 = sphi %s1537_s21, %s1967_s21   ;;  %s1490_s20 = sphi %s1535_s20, %s1966_s20   ;;  %s1486_s19 = sphi %s1533_s19, %s1965_s19   ;;  %s1482_s18 = sphi %s1531_s18, %s1964_s18  }
   0x4   : > { %s1556_s24 = sadd.s32 1, %s1494_s21   ;;  %s135_s25 = sadd.s32 1, %s1490_s20 }
   0x5   : > { %s132_s26 = ssub.s32 %s1494_s21, %s1556_s24  ;;  %p145_p0 = scmp.ne.s32.totalorder %s1490_s20, %s1486_s19 }
   0x6   : > { %p133_p1 = scmp.eq.s32.totalorder %s132_s26, 0  ;;  %p146_p2 = scmp.eq.s32.totalorder %s1552_s22, 1 }
   0x7   : > { %p151_p3 = scmp.ne.s32.totalorder %s1486_s19, %s1482_s18  ;;  %p152_p4 = scmp.eq.s32.totalorder %s1180_s23, 1 }
   0x8   : > { %s1567_s27 = scalar_select %p133_p1, %s1490_s20, %s135_s25  }
   0x9   : > { %p1569_p5 = por %p146_p2, %p145_p0  ;;  %p1573_p6 = por %p152_p4, %p151_p3 }
   0xa   : > { %p1183_p7 = scmp.ge.s32.totalorder %s1494_s21, 1  ;;  %p191_p8 = scmp.lt.s32.totalorder %s1494_s21, 3 }
   0xc   : > { %p192_p9 = pnand %p1183_p7, %p191_p8 }
   0xd   : > { %s1185_s7 = sshll.u32 (!%p192_p9), %s1552_s22, 4  ;;  %s216_s14 = sand.u32 (!%p192_p9), 1, %s1486_s19  }
   0xe   : > { %195 = sbr.rel (%p192_p9) target bundleno = 598 (0x256), region = 40  ;;  %p220_p10 = scmp.lt.s32.totalorder (!%p192_p9), %s1185_s7, 31 }
   0xf   : > { %s1210_s17 = sshll.u32 (!%p192_p9), %s1552_s22, 8  ;;  %s1916_s22 = scalar_lea.sflag (!%p192_p9), [#allocation4], %s216_s14 }
  0x10   : > { %s1907_s30 = scalar_lea.hbm (!%p192_p9), %s1961_s5, %s1210_s17 }
  0x13   : > { %v1350_v0 = vld [vmem:[%s1957_s1 + $0x38] sm:$0xff]   ;;  %v1351_v1 = vld [vmem:[%s1957_s1 + $0x30] sm:$0xff]   ;;  %s1969_s7 = smov (!%p220_p10, %s1185_s7), 31  ;;  %v1496_v2 = vmov 0.0   ;;  %v1352_v3 = vld [vmem:[%s1957_s1 + $0x28] sm:$0xff]   ;;  %vm1079_vm1 = vcmask 1041409  }
  0x14   : > { %1243 = vmatprep.subr.bf16.mxu0 %v1350_v0  ;;  %243 = vst [vmem:[#allocation2 + $0x5] sm:$0x7] %v1496_v2  ;;  %244 = vst [vmem:[#allocation2 + $0xd] sm:$0x7] %v1496_v2  ;;  %s1186_s12 = sshll.u32 %s1969_s7, 3  ;;  %v1353_v4 = vld [vmem:[%s1957_s1 + $0x20] sm:$0xff]  }
  0x15   : > { %1244 = vmatpush3.bf16.msra.mxu0 %v1350_v0  ;;  %245 = vst [vmem:[#allocation2 + $0x15] sm:$0x7] %v1496_v2  ;;  %246 = vst [vmem:[#allocation2 + $0x1d] sm:$0x7] %v1496_v2  ;;  %s1592_s15 = scalar_lea.vmem %s1956_s0, %s1186_s12  ;;  %v1354_v11 = vld [vmem:[%s1957_s1 + $0x18] sm:$0xff]   ;;  %v1359_v23 = vld [vmem:[%s1959_s3 + $0x30] sm:$0xff]  }
  0x16   : > { %247 = vst [vmem:[#allocation2 + $0x25] sm:$0x7] %v1496_v2  ;;  %248 = vst [vmem:[#allocation2 + $0x2d] sm:$0x7] %v1496_v2  ;;  %1245 = vmatprep.subr.bf16.mxu0 %v1351_v1  ;;  %v227_v5 = vld [vmem:[%s1592_s15] sm:$0x1f] }
  0x17   : > { %249 = vst [vmem:[#allocation2 + $0x35] sm:$0x7] %v1496_v2  ;;  %250 = vst [vmem:[#allocation2 + $0x3d] sm:$0x7] %v1496_v2  ;;  %v228_v6 = vld [vmem:[%s1592_s15 + $0x8] sm:$0x1f] }
  0x18   : > { %251 = vst [vmem:[#allocation2 + $0x45] sm:$0x7] %v1496_v2  ;;  %252 = vst [vmem:[#allocation2 + $0x4d] sm:$0x7] %v1496_v2  ;;  %v229_v7 = vld [vmem:[%s1592_s15 + $0x10] sm:$0x1f] }
  0x19   : > { %253 = vst [vmem:[#allocation2 + $0x55] sm:$0x7] %v1496_v2  ;;  %254 = vst [vmem:[#allocation2 + $0x5d] sm:$0x7] %v1496_v2  ;;  %1246 = vmatpush3.bf16.msra.mxu0 %v1351_v1  ;;  %v230_v8 = vld [vmem:[%s1592_s15 + $0x18] sm:$0x1f] }
  0x1a   : > { %255 = vst [vmem:[#allocation2 + $0x65] sm:$0x7] %v1496_v2  ;;  %256 = vst [vmem:[#allocation2 + $0x6d] sm:$0x7] %v1496_v2  ;;  %1247 = vmatprep.subr.bf16.mxu0 %v1352_v3  ;;  %v231_v9 = vld [vmem:[%s1592_s15 + $0x20] sm:$0x1f] }
  0x1b   : > { %257 = vst [vmem:[#allocation2 + $0x75] sm:$0x7] %v1496_v2  ;;  %258 = vst [vmem:[#allocation2 + $0x7d] sm:$0x7] %v1496_v2  ;;  %v232_v10 = vld [vmem:[%s1592_s15 + $0x28] sm:$0x1f] }
  0x1c   : > { %259 = vst [vmem:[#allocation2] sm:$0x1f] %v227_v5  ;;  %260 = vst [vmem:[#allocation2 + $0x8] sm:$0x1f] %v228_v6  ;;  %v233_v12 = vld [vmem:[%s1592_s15 + $0x30] sm:$0x1f] }
  0x1d   : > { %261 = vst [vmem:[#allocation2 + $0x10] sm:$0x1f] %v229_v7  ;;  %262 = vst [vmem:[#allocation2 + $0x18] sm:$0x1f] %v230_v8  ;;  %v234_v13 = vld [vmem:[%s1592_s15 + $0x38] sm:$0x1f]  ;;  %1248 = vmatpush3.bf16.msra.mxu0 %v1352_v3 }
  0x1e   : > { %263 = vst [vmem:[#allocation2 + $0x20] sm:$0x1f] %v231_v9  ;;  %264 = vst [vmem:[#allocation2 + $0x28] sm:$0x1f] %v232_v10  ;;  %v235_v14 = vld [vmem:[%s1592_s15 + $0x40] sm:$0x1f]  ;;  %1249 = vmatprep.subr.bf16.mxu0 %v1353_v4 }
  0x1f   : > { %265 = vst [vmem:[#allocation2 + $0x30] sm:$0x1f] %v233_v12  ;;  %266 = vst [vmem:[#allocation2 + $0x38] sm:$0x1f] %v234_v13  ;;  %v236_v15 = vld [vmem:[%s1592_s15 + $0x48] sm:$0x1f] }
  0x20   : > { %267 = vst [vmem:[#allocation2 + $0x40] sm:$0x1f] %v235_v14  ;;  %v237_v16 = vld [vmem:[%s1592_s15 + $0x50] sm:$0x1f]  ;;  %v238_v17 = vld [vmem:[%s1592_s15 + $0x58] sm:$0x1f] }
  0x21   : > { %268 = vst [vmem:[#allocation2 + $0x48] sm:$0x1f] %v236_v15  ;;  %269 = vst [vmem:[#allocation2 + $0x50] sm:$0x1f] %v237_v16  ;;  %v239_v18 = vld [vmem:[%s1592_s15 + $0x60] sm:$0x1f]  ;;  %1250 = vmatpush3.bf16.msra.mxu0 %v1353_v4 }
  0x22   : > { %270 = vst [vmem:[#allocation2 + $0x58] sm:$0x1f] %v238_v17  ;;  %v240_v19 = vld [vmem:[%s1592_s15 + $0x68] sm:$0x1f]  ;;  %v241_v20 = vld [vmem:[%s1592_s15 + $0x70] sm:$0x1f]  ;;  %1251 = vmatprep.subr.bf16.mxu0 %v1354_v11 }
  0x23   : > { %271 = vst [vmem:[#allocation2 + $0x60] sm:$0x1f] %v239_v18  ;;  %272 = vst [vmem:[#allocation2 + $0x68] sm:$0x1f] %v240_v19  ;;  %v242_v21 = vld [vmem:[%s1592_s15 + $0x78] sm:$0x1f] }
  0x24   : > { %273 = vst [vmem:[#allocation2 + $0x70] sm:$0x1f] %v241_v20  ;;  %274 = vst [vmem:[#allocation2 + $0x78] sm:$0x1f] %v242_v21  ;;  %v1358_v22 = vld [vmem:[%s1959_s3 + $0x38] sm:$0xff]   ;;  %v1355_v24 = vld [vmem:[%s1957_s1 + $0x10] sm:$0xff]  }
  0x25   : > { %v1625_v25 = vld [vmem:[#allocation2] sm:$0xff]  ;;  %v1627_v26 = vld [vmem:[#allocation2 + $0x8] sm:$0xff]  ;;  %1275 = vmatprep.subr.bf16.mxu1 %v1358_v22  ;;  %1252 = vmatpush3.bf16.msra.mxu0 %v1354_v11  ;;  %v1362_v32 = vld [vmem:[%s1959_s3 + $0x18] sm:$0xff]   ;;  %vm1081_vm2 = vcmask 1042434   ;;  %vm1083_vm3 = vcmask 1043459   ;;  %vm1085_vm4 = vcmask 1044484  }
  0x26   : > { %v291_v27 = vpack.c.bf16 %v1627_v26, %v1625_v25  ;;  %1276 = vmatpush3.bf16.msra.mxu1 %v1358_v22  ;;  %1253 = vmatprep.subr.bf16.mxu0 %v1355_v24  ;;  %v1356_v28 = vld [vmem:[%s1957_s1 + $0x8] sm:$0xff]   ;;  %v1361_v30 = vld [vmem:[%s1959_s3 + $0x20] sm:$0xff]   ;;  %v1646_v33 = vld [vmem:[#allocation2 + $0x10] sm:$0xff]  ;;  %s1184_s15 = sshll.u32 %s216_s14, 4  ;;  %vm1087_vm5 = vcmask 1045509   ;;  %vm1089_vm6 = vcmask 1046534  }
  0x27   : > { %1277 = vmatprep.subr.bf16.mxu1 %v1359_v23  ;;  %v1360_v29 = vld [vmem:[%s1959_s3 + $0x28] sm:$0xff]   ;;  %v1357_v31 = vld [vmem:[%s1957_s1] sm:$0xff]   ;;  %v1648_v34 = vld [vmem:[#allocation2 + $0x18] sm:$0xff]  ;;  %vm1091_vm7 = vcmask 1047559   ;;  %s1892_s16 = scalar_lea.vmem [#allocation3], %s1184_s15  ;;  %s1498_s7 = smov [#allocation3]  }
  0x28   : > { %1259 = vmatprep.mubr.bf16.mxu0 %v291_v27  ;;  %v1650_v35 = vld [vmem:[#allocation2 + $0x20] sm:$0xff]  ;;  %v1652_v36 = vld [vmem:[#allocation2 + $0x28] sm:$0xff]  ;;  %v292_v37 = vpack.c.bf16 %v1648_v34, %v1646_v33  ;;  %v1658_v39 = vld [vmem:[#allocation2 + $0x30] sm:$0xff]  ;;  %s1118_s23 = sshll.u32 %s1892_s16, 4  ;;  %s1438_s8 = sshll.u32 %s1498_s7, 4  ;;  %s1909_s23 = int_to_ptr.vmem [resolvable:$true] %s1118_s23  ;;  %s1439_s8 = int_to_ptr.vmem [resolvable:$false] %s1438_s8 }
  0x29   : > { %1254 = vmatpush3.bf16.msra.mxu0 %v1355_v24  ;;  %v293_v38 = vpack.c.bf16 %v1652_v36, %v1650_v35  ;;  %v1660_v40 = vld [vmem:[#allocation2 + $0x38] sm:$0xff]  ;;  %v1662_v41 = vld [vmem:[#allocation2 + $0x40] sm:$0xff]  ;;  %v1664_v42 = vld [vmem:[#allocation2 + $0x48] sm:$0xff]  ;;  %s1434_s6 = scalar_lea.vmem %s1909_s23, 256  ;;  %s1440_s9 = scalar_lea.vmem %s1439_s8, 512 }
  0x2a   : > { %1278 = vmatpush3.bf16.msra.mxu1 %v1359_v23  ;;  %1255 = vmatprep.subr.bf16.mxu0 %v1356_v28  ;;  %v294_v43 = vpack.c.bf16 %v1660_v40, %v1658_v39  ;;  %v295_v44 = vpack.c.bf16 %v1664_v42, %v1662_v41  ;;  %v1670_v45 = vld [vmem:[#allocation2 + $0x50] sm:$0xff]  ;;  %v1672_v46 = vld [vmem:[#allocation2 + $0x58] sm:$0xff]  ;;  %v287_v47 = vld [vmem:[#allocation2 + $0x60] sm:$0xff]  ;;  %p1435_p11 = scmp.ne.s32.totalorder %s1909_s23, %s1434_s6  ;;  %p1441_p0 = scmp.lt.s32.totalorder %s1909_s23, %s1439_s8 }
  0x2b   : > { %1279 = vmatprep.subr.bf16.mxu1 %v1360_v29  ;;  %v288_v48 = vld [vmem:[#allocation2 + $0x68] sm:$0xff]  ;;  %v296_v49 = vpack.c.bf16 %v1672_v46, %v1670_v45  ;;  %v289_v51 = vld [vmem:[#allocation2 + $0x70] sm:$0xff]  ;;  %v290_v52 = vld [vmem:[#allocation2 + $0x78] sm:$0xff]  ;;  %p1442_p1 = scmp.lt.s32.totalorder %s1440_s9, %s1434_s6 }
  0x2c   : > { %v297_v50 = vpack.c.bf16 %v288_v48, %v287_v47  ;;  %v298_v53 = vpack.c.bf16 %v290_v52, %v289_v51  ;;  %v1363_v54 = vld [vmem:[%s1959_s3 + $0x10] sm:$0xff]   ;;  %v1364_v55 = vld [vmem:[%s1959_s3 + $0x8] sm:$0xff]   ;;  %v1365_v56 = vld [vmem:[%s1959_s3] sm:$0xff]   ;;  %p1436_p12 = pnand %p1435_p11, %p1569_p5 }
  0x2d   : > { %1256 = vmatpush3.bf16.msra.mxu0 %v1356_v28  ;;  %v1187_v59 = vld [vmem:[%s1958_s2] ss:$0 sm:$0xff]  ;;  %p1443_p2 = por %p1442_p1, %p1441_p0 }
  0x2e   : > { %1280 = vmatpush3.bf16.msra.mxu1 %v1360_v29  ;;  %1257 = vmatprep.subr.bf16.mxu0 %v1357_v31  ;;  %p1437_p13 = pneg %p1436_p12 }
  0x2f   : > { %1281 = vmatprep.subr.bf16.mxu1 %v1361_v30 }
  0x30   : > { %p1444_p3 = pnand %p1443_p2, %p1437_p13 }
  0x31   : > { %1258 = vmatpush3.bf16.msra.mxu0 %v1357_v31 }
  0x32   : > { %1282 = vmatpush3.bf16.msra.mxu1 %v1361_v30 }
  0x33   : > { %1283 = vmatprep.subr.bf16.mxu1 %v1362_v32 }
  0x34   : > { %1260 = vmatmul.mubr.bf16.vlgmr.msra.gmra.mxu0 %v292_v37 }
  0x35   : > { %1263 = vmatprep.mubr.bf16.mxu0 %v293_v38 }
  0x36   : > { %1284 = vmatpush3.bf16.msra.mxu1 %v1362_v32 }
  0x37   : > { %1285 = vmatprep.subr.bf16.mxu1 %v1363_v54 }
  0x3a   : > { %1286 = vmatpush3.bf16.msra.mxu1 %v1363_v54 }
  0x3b   : > { %1287 = vmatprep.subr.bf16.mxu1 %v1364_v55 }
  0x3c   : > { %1264 = vmatmul.mubr.bf16.gmra.mxu0 %v294_v43 }
  0x3d   : > { %1267 = vmatprep.mubr.bf16.mxu0 %v295_v44 }
  0x3e   : > { %1288 = vmatpush3.bf16.msra.mxu1 %v1364_v55 }
  0x3f   : > { %1289 = vmatprep.subr.bf16.mxu1 %v1365_v56 }
  0x42   : > { %1290 = vmatpush3.bf16.msra.mxu1 %v1365_v56 }
  0x44   : > { %1268 = vmatmul.mubr.bf16.gmra.mxu0 %v296_v49 }
  0x45   : > { %1271 = vmatprep.mubr.bf16.mxu0 %v297_v50 }
  0x4c   : > { %1272 = vmatmul.mubr.bf16.gmra.mxu0 %v298_v53 }
  0xf4   : > { %v1261_v57 = vpop.f32.mrf.mxu0 }
  0xf5   : > { %v413_v63 = vadd.f32 %v1261_v57, %v1187_v59 }
  0xf6   : > { %v404_v58 = vpop.f32.mrf.mxu0 }
  0xf7   : > { %v405_v61 = vadd.f32 %v1187_v59, %v404_v58  ;;  %v469_v6 = vmax.f32 %v413_v63, 0.0  ;;  %v659_v63 = vlaneseq }
  0xf8   : > { %v1262_v60 = vpop.f32.mrf.mxu0 }
  0xf9   : > { %v416_v62 = vadd.f32 %v1262_v60, %v1187_v59  ;;  %v467_v4 = vmax.f32 %v405_v61, 0.0 }
  0xfa   : > { %v407_v0 = vpop.f32.mrf.mxu0 }
  0xfb   : > { %v408_v1 = vadd.f32 %v1187_v59, %v407_v0  ;;  %v470_v2 = vmax.f32 %v416_v62, 0.0  ;;  %v660_v0 = vshrl.u32 %v659_v63, 7 }
  0xfc   : > { %v1265_v3 = vpop.f32.mrf.mxu0 }
  0xfd   : > { %v468_v5 = vmax.f32 %v408_v1, 0.0  ;;  %v484_v9 = vpack.c.bf16 %v470_v2, %v469_v6  ;;  %v429_v13 = vadd.f32 %v1265_v3, %v1187_v59  ;;  %vm661_vm0 = vcmp.lt.s32.totalorder %v660_v0, 5  ;;  %v1691_v1 = vld [vmem:[%s1960_s4] ss:$0 sm:$0xff] }
  0xfe   : > { %v420_v7 = vpop.f32.mrf.mxu0  ;;  %v1497_v3 = vmov -1e+30  }
  0xff   : > { %v483_v8 = vpack.c.bf16 %v468_v5, %v467_v4  ;;  %v421_v11 = vadd.f32 %v1187_v59, %v420_v7  ;;  %v473_v20 = vmax.f32 %v429_v13, 0.0  ;;  %v1693_v4 = vsel %vm661_vm0, 0.0, %v1497_v3 }
 0x100   : > { %v1266_v10 = vpop.f32.mrf.mxu0 }
 0x101   : > { %v432_v12 = vadd.f32 %v1266_v10, %v1187_v59  ;;  %1291 = vmatprep.mubr.bf16.mxu1 %v483_v8  ;;  %v471_v18 = vmax.f32 %v421_v11, 0.0 }
 0x102   : > { %v423_v14 = vpop.f32.mrf.mxu0  ;;  %1292 = vmatmul.mubr.bf16.vlgmr.msra.gmra.mxu1 %v484_v9 }
 0x103   : > { %v424_v15 = vadd.f32 %v1187_v59, %v423_v14  ;;  %v474_v16 = vmax.f32 %v432_v12, 0.0 }
 0x104   : > { %v1269_v17 = vpop.f32.mrf.mxu0 }
 0x105   : > { %v472_v19 = vmax.f32 %v424_v15, 0.0  ;;  %v486_v23 = vpack.c.bf16 %v474_v16, %v473_v20  ;;  %v445_v29 = vadd.f32 %v1269_v17, %v1187_v59 }
 0x106   : > { %v436_v21 = vpop.f32.mrf.mxu0 }
 0x107   : > { %v485_v22 = vpack.c.bf16 %v472_v19, %v471_v18  ;;  %v437_v27 = vadd.f32 %v1187_v59, %v436_v21  ;;  %v477_v44 = vmax.f32 %v445_v29, 0.0 }
 0x108   : > { %v1270_v24 = vpop.f32.mrf.mxu0 }
 0x109   : > { %v448_v28 = vadd.f32 %v1270_v24, %v1187_v59  ;;  %1295 = vmatprep.mubr.bf16.mxu1 %v485_v22  ;;  %v475_v38 = vmax.f32 %v437_v27, 0.0 }
 0x10a   : > { %v439_v30 = vpop.f32.mrf.mxu0  ;;  %1296 = vmatmul.mubr.bf16.gmra.mxu1 %v486_v23 }
 0x10b   : > { %v440_v31 = vadd.f32 %v1187_v59, %v439_v30  ;;  %v478_v32 = vmax.f32 %v448_v28, 0.0 }
 0x10c   : > { %v1273_v37 = vpop.f32.mrf.mxu0 }
 0x10d   : > { %v476_v43 = vmax.f32 %v440_v31, 0.0  ;;  %v488_v49 = vpack.c.bf16 %v478_v32, %v477_v44  ;;  %v461_v53 = vadd.f32 %v1273_v37, %v1187_v59 }
 0x10e   : > { %v452_v47 = vpop.f32.mrf.mxu0 }
 0x10f   : > { %v487_v48 = vpack.c.bf16 %v476_v43, %v475_v38  ;;  %v453_v51 = vadd.f32 %v1187_v59, %v452_v47  ;;  %v481_v60 = vmax.f32 %v461_v53, 0.0 }
 0x110   : > { %v1274_v50 = vpop.f32.mrf.mxu0 }
 0x111   : > { %v464_v52 = vadd.f32 %v1274_v50, %v1187_v59  ;;  %1299 = vmatprep.mubr.bf16.mxu1 %v487_v48  ;;  %v479_v57 = vmax.f32 %v453_v51, 0.0 }
 0x112   : > { %v455_v54 = vpop.f32.mrf.mxu0  ;;  %1300 = vmatmul.mubr.bf16.gmra.mxu1 %v488_v49 }
 0x113   : > { %v456_v55 = vadd.f32 %v1187_v59, %v455_v54  ;;  %v482_v56 = vmax.f32 %v464_v52, 0.0 }
 0x115   : > { %v480_v58 = vmax.f32 %v456_v55, 0.0  ;;  %v490_v62 = vpack.c.bf16 %v482_v56, %v481_v60 }
 0x117   : > { %v489_v61 = vpack.c.bf16 %v480_v58, %v479_v57 }
 0x119   : > { %1303 = vmatprep.mubr.bf16.mxu1 %v489_v61 }
 0x11a   : > { %1304 = vmatmul.mubr.bf16.gmra.mxu1 %v490_v62 }
 0x1c2   : > { %v1293_v2 = vpop.f32.mrf.mxu1 }
 0x1c3   : > { %v605_v59 = vadd.f32 %v1293_v2, %v1691_v1 }
 0x1c4   : > { %v596_v5 = vpop.f32.mrf.mxu1 }
 0x1c5   : > { %v665_v6 = vadd.f32 %v1693_v4, %v605_v59  ;;  %v597_v7 = vadd.f32 %v1691_v1, %v596_v5 }
 0x1c6   : > { %v1294_v8 = vpop.f32.mrf.mxu1 }
 0x1c7   : > { %v691_v9 = vrot.slane %v665_v6, 4  ;;  %v663_v10 = vadd.f32 %v1693_v4, %v597_v7  ;;  %v608_v11 = vadd.f32 %v1294_v8, %v1691_v1 }
 0x1c8   : > { %v599_v12 = vpop.f32.mrf.mxu1 }
 0x1c9   : > { %v692_v13 = vmax.f32 %v665_v6, %v691_v9  ;;  %v679_v14 = vrot.slane %v663_v10, 4  ;;  %v666_v15 = vadd.f32 %v1693_v4, %v608_v11  ;;  %v600_v16 = vadd.f32 %v1691_v1, %v599_v12 }
 0x1ca   : > { %v1297_v17 = vpop.f32.mrf.mxu1 }
 0x1cb   : > { %v693_v18 = vrot.slane %v692_v13, 2  ;;  %v680_v19 = vmax.f32 %v663_v10, %v679_v14  ;;  %v697_v20 = vrot.slane %v666_v15, 4  ;;  %v1703_v21 = vadd.f32 %v1693_v4, %v600_v16 }
 0x1cc   : > { %v621_v22 = vadd.f32 %v1297_v17, %v1691_v1  ;;  %v612_v23 = vpop.f32.mrf.mxu1 }
 0x1cd   : > { %v694_v24 = vmax.f32 %v692_v13, %v693_v18  ;;  %v681_v27 = vrot.slane %v680_v19, 2  ;;  %v698_v28 = vmax.f32 %v666_v15, %v697_v20  ;;  %v685_v29 = vrot.slane %v1703_v21, 4 }
 0x1ce   : > { %v1708_v30 = vadd.f32 %v1693_v4, %v621_v22  ;;  %v613_v31 = vadd.f32 %v1691_v1, %v612_v23  ;;  %v1298_v32 = vpop.f32.mrf.mxu1 }
 0x1cf   : > { %v695_v37 = vrot.slane %v694_v24, 1  ;;  %v682_v38 = vmax.f32 %v680_v19, %v681_v27  ;;  %v699_v43 = vrot.slane %v698_v28, 2  ;;  %v686_v44 = vmax.f32 %v1703_v21, %v685_v29 }
 0x1d0   : > { %v715_v47 = vrot.slane %v1708_v30, 4  ;;  %v1714_v48 = vadd.f32 %v1693_v4, %v613_v31  ;;  %v624_v49 = vadd.f32 %v1298_v32, %v1691_v1  ;;  %v615_v50 = vpop.f32.mrf.mxu1 }
 0x1d1   : > { %v696_v51 = vmax.f32 %v694_v24, %v695_v37  ;;  %v683_v52 = vrot.slane %v682_v38, 1  ;;  %v700_v53 = vmax.f32 %v698_v28, %v699_v43  ;;  %v687_v54 = vrot.slane %v686_v44, 2 }
 0x1d2   : > { %v716_v55 = vmax.f32 %v1708_v30, %v715_v47  ;;  %v703_v56 = vrot.slane %v1714_v48, 4  ;;  %v1720_v57 = vadd.f32 %v1693_v4, %v624_v49  ;;  %v616_v58 = vadd.f32 %v1691_v1, %v615_v50  ;;  %v1301_v60 = vpop.f32.mrf.mxu1 }
 0x1d3   : > { %v777_v61 = vsub.f32 %v665_v6, %v696_v51  ;;  %v684_v62 = vmax.f32 %v682_v38, %v683_v52  ;;  %v701_v63 = vrot.slane %v700_v53, 1  ;;  %v688_v0 = vmax.f32 %v686_v44, %v687_v54 }
 0x1d4   : > { %v717_v2 = vrot.slane %v716_v55, 2  ;;  %v704_v3 = vmax.f32 %v1714_v48, %v703_v56  ;;  %v721_v59 = vrot.slane %v1720_v57, 4  ;;  %v1726_v5 = vadd.f32 %v1693_v4, %v616_v58  ;;  %v628_v7 = vpop.f32.mrf.mxu1 }
 0x1d5   : > { %v795_v8 = vmul.f32 1.442695, %v777_v61  ;;  %v775_v9 = vsub.f32 %v663_v10, %v684_v62  ;;  %v702_v11 = vmax.f32 %v700_v53, %v701_v63  ;;  %v689_v12 = vrot.slane %v688_v0, 1 }
 0x1d6   : > { %v718_v13 = vmax.f32 %v716_v55, %v717_v2  ;;  %v705_v14 = vrot.slane %v704_v3, 2  ;;  %v722_v6 = vmax.f32 %v1720_v57, %v721_v59  ;;  %v709_v16 = vrot.slane %v1726_v5, 4  ;;  %v1302_v17 = vpop.f32.mrf.mxu1 }
 0x1d7   : > { %1366 = vpow2.f32 %v795_v8  ;;  %v791_v18 = vmul.f32 1.442695, %v775_v9  ;;  %v778_v19 = vsub.f32 %v666_v15, %v702_v11  ;;  %v690_v20 = vmax.f32 %v688_v0, %v689_v12 }
 0x1d8   : > { %v719_v22 = vrot.slane %v718_v13, 1  ;;  %v706_v23 = vmax.f32 %v704_v3, %v705_v14  ;;  %v723_v24 = vrot.slane %v722_v6, 2  ;;  %v710_v27 = vmax.f32 %v1726_v5, %v709_v16  ;;  %v631_v31 = vpop.f32.mrf.mxu1 }
 0x1d9   : > { %1368 = vpow2.f32 %v791_v18  ;;  %v797_v10 = vmul.f32 1.442695, %v778_v19  ;;  %v776_v28 = vsub.f32 %v1703_v21, %v690_v20  ;;  %v637_v29 = vadd.f32 %v1301_v60, %v1691_v1 }
 0x1da   : > { %v720_v32 = vmax.f32 %v718_v13, %v719_v22  ;;  %v707_v37 = vrot.slane %v706_v23, 1  ;;  %v724_v38 = vmax.f32 %v722_v6, %v723_v24  ;;  %v711_v43 = vrot.slane %v710_v27, 2  ;;  %v1305_v55 = vpop.f32.mrf.mxu1 }
 0x1db   : > { %1370 = vpow2.f32 %v797_v10  ;;  %v793_v44 = vmul.f32 1.442695, %v776_v28  ;;  %v1734_v15 = vadd.f32 %v1693_v4, %v637_v29  ;;  %v629_v47 = vadd.f32 %v1691_v1, %v628_v7 }
 0x1dc   : > { %v781_v49 = vsub.f32 %v1708_v30, %v720_v32  ;;  %v708_v50 = vmax.f32 %v706_v23, %v707_v37  ;;  %v725_v51 = vrot.slane %v724_v38, 1  ;;  %v712_v52 = vmax.f32 %v710_v27, %v711_v43  ;;  %v644_v11 = vpop.f32.mrf.mxu1 }
 0x1dd   : > { %1372 = vpow2.f32 %v793_v44  ;;  %v739_v21 = vrot.slane %v1734_v15, 4  ;;  %v1740_v53 = vadd.f32 %v1693_v4, %v629_v47  ;;  %v640_v54 = vadd.f32 %v1302_v17, %v1691_v1 }
 0x1de   : > { %v803_v56 = vmul.f32 1.442695, %v781_v49  ;;  %v779_v58 = vsub.f32 %v1714_v48, %v708_v50  ;;  %v726_v60 = vmax.f32 %v724_v38, %v725_v51  ;;  %v713_v61 = vrot.slane %v712_v52, 1 }
 0x1df   : > { %v740_v62 = vmax.f32 %v1734_v15, %v739_v21  ;;  %v727_v30 = vrot.slane %v1740_v53, 4  ;;  %v1747_v63 = vadd.f32 %v1693_v4, %v640_v54  ;;  %v632_v0 = vadd.f32 %v1691_v1, %v631_v31 }
 0x1e0   : > { %1374 = vpow2.f32 %v803_v56  ;;  %v799_v2 = vmul.f32 1.442695, %v779_v58  ;;  %v782_v3 = vsub.f32 %v1720_v57, %v726_v60  ;;  %v714_v59 = vmax.f32 %v712_v52, %v713_v61 }
 0x1e1   : > { %v741_v7 = vrot.slane %v740_v62, 2  ;;  %v728_v8 = vmax.f32 %v1740_v53, %v727_v30  ;;  %v745_v48 = vrot.slane %v1747_v63, 4  ;;  %v1754_v9 = vadd.f32 %v1693_v4, %v632_v0 }
 0x1e2   : > { %1376 = vpow2.f32 %v799_v2  ;;  %v805_v12 = vmul.f32 1.442695, %v782_v3  ;;  %v780_v13 = vsub.f32 %v1726_v5, %v714_v59  ;;  %v653_v14 = vadd.f32 %v1305_v55, %v1691_v1 }
 0x1e3   : > { %v742_v6 = vmax.f32 %v740_v62, %v741_v7  ;;  %v729_v16 = vrot.slane %v728_v8, 2  ;;  %v746_v57 = vmax.f32 %v1747_v63, %v745_v48  ;;  %v733_v17 = vrot.slane %v1754_v9, 4 }
 0x1e4   : > { %v1760_v18 = vpop.eup %1366  ;;  %1378 = vpow2.f32 %v805_v12  ;;  %v801_v19 = vmul.f32 1.442695, %v780_v13  ;;  %v1763_v20 = vadd.f32 %v1693_v4, %v653_v14  ;;  %v645_v22 = vadd.f32 %v1691_v1, %v644_v11 }
 0x1e5   : > { %v835_v23 = vrot.slane %v1760_v18, 4  ;;  %v743_v5 = vrot.slane %v742_v6, 1  ;;  %v730_v24 = vmax.f32 %v728_v8, %v729_v16  ;;  %v747_v27 = vrot.slane %v746_v57, 2 }
 0x1e6   : > { %v1767_v10 = vpop.eup %1368  ;;  %1380 = vpow2.f32 %v801_v19  ;;  %v734_v28 = vmax.f32 %v1754_v9, %v733_v17  ;;  %v763_v29 = vrot.slane %v1763_v20, 4  ;;  %v1772_v31 = vadd.f32 %v1693_v4, %v645_v22 }
 0x1e7   : > { %v836_v32 = vadd.f32 %v1760_v18, %v835_v23  ;;  %v823_v37 = vrot.slane %v1767_v10, 4  ;;  %v744_v38 = vmax.f32 %v742_v6, %v743_v5  ;;  %v731_v43 = vrot.slane %v730_v24, 1 }
 0x1e8   : > { %v1776_v44 = vpop.eup %1370  ;;  %v748_v47 = vmax.f32 %v746_v57, %v747_v27  ;;  %v735_v49 = vrot.slane %v734_v28, 2  ;;  %v764_v50 = vmax.f32 %v1763_v20, %v763_v29  ;;  %v751_v61 = vrot.slane %v1772_v31, 4 }
 0x1e9   : > { %v837_v51 = vrot.slane %v836_v32, 2  ;;  %v824_v52 = vadd.f32 %v1767_v10, %v823_v37  ;;  %v841_v21 = vrot.slane %v1776_v44, 4  ;;  %v785_v54 = vsub.f32 %v1734_v15, %v744_v38 }
 0x1ea   : > { %v1782_v55 = vpop.eup %1372  ;;  %v732_v56 = vmax.f32 %v730_v24, %v731_v43  ;;  %v749_v58 = vrot.slane %v748_v47, 1  ;;  %v736_v60 = vmax.f32 %v734_v28, %v735_v49  ;;  %v765_v37 = vrot.slane %v764_v50, 2 }
 0x1eb   : > { %v838_v62 = vadd.f32 %v837_v51, %v836_v32  ;;  %v825_v30 = vrot.slane %v824_v52, 2  ;;  %v842_v0 = vadd.f32 %v1776_v44, %v841_v21  ;;  %v829_v2 = vrot.slane %v1782_v55, 4 }
 0x1ec   : > { %v811_v3 = vmul.f32 1.442695, %v785_v54  ;;  %v783_v59 = vsub.f32 %v1740_v53, %v732_v56  ;;  %v750_v7 = vmax.f32 %v748_v47, %v749_v58  ;;  %v737_v8 = vrot.slane %v736_v60, 1  ;;  %v1306_v47 = vpop.f32.mrf.mxu1 }
 0x1ed   : > { %v1788_v48 = vpop.eup %1374  ;;  %v839_v15 = vrot.slane %v838_v62, 1  ;;  %v826_v11 = vadd.f32 %v825_v30, %v824_v52  ;;  %v843_v12 = vrot.slane %v842_v0, 2  ;;  %v830_v13 = vadd.f32 %v1782_v55, %v829_v2 }
 0x1ee   : > { %v859_v14 = vrot.slane %v1788_v48, 4  ;;  %1382 = vpow2.f32 %v811_v3  ;;  %v807_v6 = vmul.f32 1.442695, %v783_v59  ;;  %v786_v16 = vsub.f32 %v1747_v63, %v750_v7 }
 0x1ef   : > { %v1793_v57 = vpop.eup %1376  ;;  %v840_v17 = vadd.f32 %v839_v15, %v838_v62  ;;  %v827_v19 = vrot.slane %v826_v11, 1  ;;  %v844_v53 = vadd.f32 %v843_v12, %v842_v0  ;;  %v831_v22 = vrot.slane %v830_v13, 2  ;;  %v647_v15 = vpop.f32.mrf.mxu1 }
 0x1f0   : > { %v860_v23 = vadd.f32 %v1788_v48, %v859_v14  ;;  %v847_v5 = vrot.slane %v1793_v57, 4  ;;  %1384 = vpow2.f32 %v807_v6  ;;  %v813_v24 = vmul.f32 1.442695, %v786_v16 }
 0x1f1   : > { %v1797_v27 = vpop.eup %1378  ;;  %v828_v28 = vadd.f32 %v827_v19, %v826_v11  ;;  %v845_v29 = vrot.slane %v844_v53, 1  ;;  %v832_v32 = vadd.f32 %v831_v22, %v830_v13  ;;  %v738_v21 = vmax.f32 %v736_v60, %v737_v8 }
 0x1f2   : > { %v861_v38 = vrot.slane %v860_v23, 2  ;;  %v848_v63 = vadd.f32 %v1793_v57, %v847_v5  ;;  %v865_v43 = vrot.slane %v1797_v27, 4  ;;  %1386 = vpow2.f32 %v813_v24 }
 0x1f3   : > { %v1801_v49 = vpop.eup %1380  ;;  %1388 = vrcp.f32 %v840_v17  ;;  %v846_v51 = vadd.f32 %v845_v29, %v844_v53  ;;  %v833_v52 = vrot.slane %v832_v32, 1  ;;  %v784_v0 = vsub.f32 %v1754_v9, %v738_v21 }
 0x1f4   : > { %1390 = vrcp.f32 %v828_v28  ;;  %v849_v54 = vrot.slane %v848_v63, 2  ;;  %v866_v56 = vadd.f32 %v1797_v27, %v865_v43  ;;  %v853_v58 = vrot.slane %v1801_v49, 4 }
 0x1f5   : > { %v834_v62 = vadd.f32 %v833_v52, %v832_v32  ;;  %v862_v30 = vadd.f32 %v861_v38, %v860_v23  ;;  %v766_v2 = vmax.f32 %v764_v50, %v765_v37  ;;  %1392 = vrcp.f32 %v846_v51 }
 0x1f6   : > { %v850_v3 = vadd.f32 %v849_v54, %v848_v63  ;;  %v867_v59 = vrot.slane %v866_v56, 2  ;;  %v854_v7 = vadd.f32 %v1801_v49, %v853_v58  ;;  %v809_v11 = vmul.f32 1.442695, %v784_v0 }
 0x1f7   : > { %1394 = vrcp.f32 %v834_v62  ;;  %v767_v60 = vrot.slane %v766_v2, 1  ;;  %v752_v8 = vmax.f32 %v1772_v31, %v751_v61  ;;  %v656_v6 = vadd.f32 %v1306_v47, %v1691_v1 }
 0x1f8   : > { %v851_v12 = vrot.slane %v850_v3, 1  ;;  %v868_v13 = vadd.f32 %v867_v59, %v866_v56  ;;  %v855_v14 = vrot.slane %v854_v7, 2  ;;  %1396 = vpow2.f32 %v809_v11 }
 0x1f9   : > { %v768_v16 = vmax.f32 %v766_v2, %v767_v60  ;;  %v753_v9 = vrot.slane %v752_v8, 2  ;;  %v648_v50 = vadd.f32 %v1691_v1, %v647_v15  ;;  %v1811_v53 = vadd.f32 %v1693_v4, %v656_v6 }
 0x1fa   : > { %v852_v17 = vadd.f32 %v851_v12, %v850_v3  ;;  %v856_v19 = vadd.f32 %v855_v14, %v854_v7  ;;  %v863_v23 = vrot.slane %v862_v30, 1  ;;  %v869_v43 = vrot.slane %v868_v13, 1 }
 0x1fb   : > { %v1813_v22 = vpop.eup %1382  ;;  %v789_v61 = vsub.f32 %v1763_v20, %v768_v16  ;;  %v754_v5 = vmax.f32 %v752_v8, %v753_v9  ;;  %v1817_v24 = vadd.f32 %v1693_v4, %v648_v50  ;;  %v769_v1 = vrot.slane %v1811_v53, 4 }
 0x1fc   : > { %1398 = vrcp.f32 %v852_v17  ;;  %v857_v28 = vrot.slane %v856_v19, 1  ;;  %v883_v29 = vrot.slane %v1813_v22, 4  ;;  %v864_v56 = vadd.f32 %v863_v23, %v862_v30 }
 0x1fd   : > { %v1821_v32 = vpop.eup %1384  ;;  %v819_v37 = vmul.f32 1.442695, %v789_v61  ;;  %v755_v38 = vrot.slane %v754_v5, 1  ;;  %v757_v63 = vrot.slane %v1817_v24, 4  ;;  %v770_v4 = vmax.f32 %v1811_v53, %v769_v1 }
 0x1fe   : > { %v858_v47 = vadd.f32 %v857_v28, %v856_v19  ;;  %v884_v20 = vadd.f32 %v1813_v22, %v883_v29  ;;  %v871_v51 = vrot.slane %v1821_v32, 4  ;;  %v870_v12 = vadd.f32 %v869_v43, %v868_v13 }
 0x1ff   : > { %v1827_v52 = vpop.eup %1386  ;;  %1400 = vpow2.f32 %v819_v37  ;;  %v756_v21 = vmax.f32 %v754_v5, %v755_v38  ;;  %v758_v54 = vmax.f32 %v1817_v24, %v757_v63  ;;  %v771_v3 = vrot.slane %v770_v4, 2 }
 0x200   : > { %v1389_v58 = vpop.eup %1388  ;;  %v885_v62 = vrot.slane %v884_v20, 2  ;;  %v872_v0 = vadd.f32 %v1821_v32, %v871_v51  ;;  %v889_v2 = vrot.slane %v1827_v52, 4  ;;  %1402 = vrcp.f32 %v858_v47 }
 0x201   : > { %v1391_v59 = vpop.eup %1390  ;;  %v787_v7 = vsub.f32 %v1772_v31, %v756_v21  ;;  %v759_v15 = vrot.slane %v758_v54, 2  ;;  %v772_v8 = vmax.f32 %v770_v4, %v771_v3  ;;  %1404 = vrcp.f32 %v864_v56 }
 0x202   : > { %v873_v11 = vrot.slane %v872_v0, 2  ;;  %v890_v60 = vadd.f32 %v1827_v52, %v889_v2  ;;  %v1393_v14 = vpop.eup %1392  ;;  %v886_v6 = vadd.f32 %v885_v62, %v884_v20  ;;  %v920_v23 = vmul.f32 %v1391_v59, %v1767_v10 }
 0x203   : > { %v815_v30 = vmul.f32 1.442695, %v787_v7  ;;  %v760_v16 = vmax.f32 %v758_v54, %v759_v15  ;;  %v773_v19 = vrot.slane %v772_v8, 1  ;;  %v924_v5 = vmul.f32 %v1389_v58, %v1760_v18 }
 0x204   : > { %v1395_v9 = vpop.eup %1394  ;;  %v874_v50 = vadd.f32 %v873_v11, %v872_v0  ;;  %v891_v17 = vrot.slane %v890_v60, 2  ;;  %v926_v37 = vmul.f32 %v1393_v14, %v1776_v44  ;;  %v887_v38 = vrot.slane %v886_v6, 1 }
 0x205   : > { %1406 = vpow2.f32 %v815_v30  ;;  %v761_v31 = vrot.slane %v760_v16, 1  ;;  %v922_v61 = vmul.f32 %v1395_v9, %v1782_v55  ;;  %v1837_v28 = vpop.eup %1396  ;;  %v774_v1 = vmax.f32 %v772_v8, %v773_v19 }
 0x206   : > { %v875_v13 = vrot.slane %v874_v50, 1  ;;  %v892_v29 = vadd.f32 %v891_v17, %v890_v60  ;;  %v877_v63 = vrot.slane %v1837_v28, 4  ;;  %1408 = vrcp.f32 %v870_v12 }
 0x207   : > { %v762_v43 = vmax.f32 %v760_v16, %v761_v31  ;;  %v790_v10 = vsub.f32 %v1811_v53, %v774_v1  ;;  %v951_v20 = vmul.f32 %v920_v23, %v1625_v25  ;;  %v952_v55 = vmul.f32 %v922_v61, %v1627_v26 }
 0x208   : > { %v876_v47 = vadd.f32 %v875_v13, %v874_v50  ;;  %v878_v51 = vadd.f32 %v1837_v28, %v877_v63  ;;  %v893_v21 = vrot.slane %v892_v29, 1  ;;  %v888_v56 = vadd.f32 %v887_v38, %v886_v6 }
 0x209   : > { %v1399_v18 = vpop.eup %1398  ;;  %v788_v4 = vsub.f32 %v1817_v24, %v762_v43  ;;  %v821_v54 = vmul.f32 1.442695, %v790_v10  ;;  %v953_v0 = vmul.f32 %v924_v5, %v1646_v33  ;;  %v954_v25 = vmul.f32 %v926_v37, %v1648_v34 }
 0x20a   : > { %v928_v44 = vmul.f32 %v1399_v18, %v1793_v57  ;;  %v879_v58 = vrot.slane %v878_v51, 2  ;;  %1410 = vrcp.f32 %v876_v47  ;;  %v967_v26 = vrot.slane %v951_v20, 4 }
 0x20b   : > { %v817_v62 = vmul.f32 1.442695, %v788_v4  ;;  %v973_v53 = vrot.slane %v952_v55, 4  ;;  %1412 = vpow2.f32 %v821_v54  ;;  %v894_v7 = vadd.f32 %v893_v21, %v892_v29 }
 0x20c   : > { %v1848_v2 = vpop.eup %1400  ;;  %v880_v3 = vadd.f32 %v879_v58, %v878_v51  ;;  %v955_v57 = vmul.f32 %v928_v44, %v1650_v35  ;;  %v979_v11 = vrot.slane %v953_v0, 4  ;;  %v968_v34 = vadd.f32 %v967_v26, %v951_v20 }
 0x20d   : > { %v907_v59 = vrot.slane %v1848_v2, 4  ;;  %v1403_v24 = vpop.eup %1402  ;;  %1414 = vpow2.f32 %v817_v62  ;;  %v974_v12 = vadd.f32 %v973_v53, %v952_v55  ;;  %v985_v14 = vrot.slane %v954_v25, 4 }
 0x20e   : > { %1416 = vrcp.f32 %v888_v56  ;;  %v881_v15 = vrot.slane %v880_v3, 1  ;;  %v1405_v60 = vpop.eup %1404  ;;  %v930_v8 = vmul.f32 %v1403_v24, %v1801_v49  ;;  %v991_v50 = vrot.slane %v955_v57, 4 }
 0x20f   : > { %v908_v33 = vadd.f32 %v1848_v2, %v907_v59  ;;  %v932_v16 = vmul.f32 %v1405_v60, %v1788_v48  ;;  %1418 = vrcp.f32 %v894_v7  ;;  %v980_v19 = vadd.f32 %v979_v11, %v953_v0 }
 0x210   : > { %v882_v6 = vadd.f32 %v881_v15, %v880_v3  ;;  %v956_v31 = vmul.f32 %v930_v8, %v1652_v36  ;;  %v969_v49 = vrot.slane %v968_v34, 2  ;;  %v975_v61 = vrot.slane %v974_v12, 2 }
 0x211   : > { %v909_v30 = vrot.slane %v908_v33, 2  ;;  %v986_v5 = vadd.f32 %v985_v14, %v954_v25  ;;  %v957_v1 = vmul.f32 %v932_v16, %v1658_v39  ;;  %v992_v37 = vadd.f32 %v991_v50, %v955_v57 }
 0x212   : > { %v1856_v9 = vpop.eup %1406  ;;  %1420 = vrcp.f32 %v882_v6  ;;  %v981_v47 = vrot.slane %v980_v19, 2  ;;  %v970_v10 = vadd.f32 %v969_v49, %v968_v34  ;;  %v976_v20 = vadd.f32 %v975_v61, %v974_v12 }
 0x213   : > { %v910_v35 = vadd.f32 %v909_v30, %v908_v33  ;;  %v895_v17 = vrot.slane %v1856_v9, 4  ;;  %v1409_v23 = vpop.eup %1408  ;;  %v987_v55 = vrot.slane %v986_v5, 2  ;;  %v997_v36 = vrot.slane %v956_v31, 4 }
 0x214   : > { %v934_v48 = vmul.f32 %v1409_v23, %v1797_v27  ;;  %v1003_v4 = vrot.slane %v957_v1, 4  ;;  %v993_v27 = vrot.slane %v992_v37, 2  ;;  %v982_v26 = vadd.f32 %v981_v47, %v980_v19 }
 0x215   : > { %v911_v13 = vrot.slane %v910_v35, 1  ;;  %v896_v29 = vadd.f32 %v1856_v9, %v895_v17  ;;  %v998_v44 = vadd.f32 %v997_v36, %v956_v31  ;;  %v988_v53 = vadd.f32 %v987_v55, %v986_v5 }
 0x216   : > { %v958_v43 = vmul.f32 %v934_v48, %v1660_v40  ;;  %v1004_v58 = vadd.f32 %v1003_v4, %v957_v1  ;;  %v971_v7 = vrot.slane %v970_v10, 1  ;;  %v977_v57 = vrot.slane %v976_v20, 1 }
 0x217   : > { %v897_v38 = vrot.slane %v896_v29, 2  ;;  %v912_v63 = vadd.f32 %v911_v13, %v910_v35  ;;  %v1411_v18 = vpop.eup %1410  ;;  %v999_v3 = vrot.slane %v998_v44, 2  ;;  %v994_v11 = vadd.f32 %v993_v27, %v992_v37 }
 0x218   : > { %v1009_v21 = vrot.slane %v958_v43, 4  ;;  %v1864_v54 = vpop.eup %1412  ;;  %v936_v33 = vmul.f32 %v1411_v18, %v1821_v32  ;;  %v1005_v60 = vrot.slane %v1004_v58, 2  ;;  %v983_v50 = vrot.slane %v982_v26, 1 }
 0x219   : > { %v898_v51 = vadd.f32 %v897_v38, %v896_v29  ;;  %1422 = vrcp.f32 %v912_v63  ;;  %v913_v40 = vrot.slane %v1864_v54, 4  ;;  %v1000_v12 = vadd.f32 %v999_v3, %v998_v44 }
 0x21a   : > { %v1866_v39 = vpop.eup %1414  ;;  %v1010_v62 = vadd.f32 %v1009_v21, %v958_v43  ;;  %v989_v35 = vrot.slane %v988_v53, 1  ;;  %v972_v32 = vadd.f32 %v971_v7, %v970_v10  ;;  %v978_v23 = vadd.f32 %v977_v57, %v976_v20 }
 0x21b   : > { %v899_v56 = vrot.slane %v898_v51, 1  ;;  %v1417_v0 = vpop.eup %1416  ;;  %v901_v25 = vrot.slane %v1866_v39, 4  ;;  %v914_v24 = vadd.f32 %v1864_v54, %v913_v40  ;;  %v959_v49 = vmul.f32 %v936_v33, %v1662_v41 }
 0x21c   : > { %v1419_v8 = vpop.eup %1418  ;;  %v1011_v14 = vrot.slane %v1010_v62, 2  ;;  %v940_v16 = vmul.f32 %v1417_v0, %v1813_v22  ;;  %v995_v61 = vrot.slane %v994_v11, 1  ;;  %v1006_v5 = vadd.f32 %v1005_v60, %v1004_v58 }
 0x21d   : > { %v900_v59 = vadd.f32 %v899_v56, %v898_v51  ;;  %v902_v15 = vadd.f32 %v1866_v39, %v901_v25  ;;  %v915_v34 = vrot.slane %v914_v24, 2  ;;  %v1001_v48 = vrot.slane %v1000_v12, 1 }
 0x21e   : > { %v1012_v1 = vadd.f32 %v1011_v14, %v1010_v62  ;;  %v942_v22 = vmul.f32 %v1419_v8, %v1827_v52  ;;  %v984_v38 = vadd.f32 %v983_v50, %v982_v26  ;;  %v990_v63 = vadd.f32 %v989_v35, %v988_v53 }
 0x21f   : > { %1424 = vrcp.f32 %v900_v59  ;;  %v1421_v6 = vpop.eup %1420  ;;  %v903_v30 = vrot.slane %v902_v15, 2  ;;  %v916_v17 = vadd.f32 %v915_v34, %v914_v24  ;;  %v961_v43 = vmul.f32 %v940_v16, %v1670_v45 }
 0x220   : > { %v938_v19 = vmul.f32 %v1421_v6, %v1837_v28  ;;  %v1080_v41 = vsel %vm1079_vm1, %v978_v23, %v972_v32  ;;  %v996_v55 = vadd.f32 %v995_v61, %v994_v11  ;;  %v1007_v36 = vrot.slane %v1006_v5, 1 }
 0x221   : > { %v904_v31 = vadd.f32 %v903_v30, %v902_v15  ;;  %v917_v13 = vrot.slane %v916_v17, 1  ;;  %v1002_v18 = vadd.f32 %v1001_v48, %v1000_v12  ;;  %v1013_v51 = vrot.slane %v1012_v1, 1  ;;  %v1431_v15 = vld [vmem:[#allocation2 + $0x60] sm:$0xff] }
 0x222   : > { %v960_v29 = vmul.f32 %v938_v19, %v1664_v42  ;;  %v1015_v42 = vrot.slane %v959_v49, 4  ;;  %v1082_v52 = vsel %vm1081_vm2, %v984_v38, %v1080_v41  ;;  %v962_v4 = vmul.f32 %v942_v22, %v1672_v46 }
 0x223   : > { %v905_v37 = vrot.slane %v904_v31, 1  ;;  %v918_v28 = vadd.f32 %v917_v13, %v916_v17  ;;  %v1027_v27 = vrot.slane %v961_v43, 4  ;;  %v1084_v44 = vsel %vm1083_vm3, %v990_v63, %v1082_v52 }
 0x224   : > { %v1021_v47 = vrot.slane %v960_v29, 4  ;;  %v1008_v56 = vadd.f32 %v1007_v36, %v1006_v5  ;;  %v1016_v40 = vadd.f32 %v1015_v42, %v959_v49  ;;  %v1086_v58 = vsel %vm1085_vm4, %v996_v55, %v1084_v44  ;;  %v1432_v49 = vld [vmem:[#allocation2 + $0x78] sm:$0xff]  ;;  %v1433_v5 = vld [vmem:[#allocation2 + $0x68] sm:$0xff] }
 0x225   : > { %v906_v20 = vadd.f32 %v905_v37, %v904_v31  ;;  %1426 = vrcp.f32 %v918_v28  ;;  %v1014_v62 = vadd.f32 %v1013_v51, %v1012_v1  ;;  %v1088_v0 = vsel %vm1087_vm5, %v1002_v18, %v1086_v58 }
 0x226   : > { %v1423_v10 = vpop.eup %1422  ;;  %v1022_v21 = vadd.f32 %v1021_v47, %v960_v29  ;;  %v1033_v53 = vrot.slane %v962_v4, 4  ;;  %v1090_v46 = vsel %vm1089_vm6, %v1008_v56, %v1088_v0  ;;  %v1028_v24 = vadd.f32 %v1027_v27, %v961_v43 }
 0x227   : > { %1428 = vrcp.f32 %v906_v20  ;;  %v948_v45 = vmul.f32 %v1423_v10, %v1848_v2  ;;  %v1430_v2 = vld [vmem:[#allocation2 + $0x70] sm:$0xff]  ;;  %v1092_v7 = vsel %vm1091_vm7, %v1014_v62, %v1090_v46  ;;  %v1017_v57 = vrot.slane %v1016_v40, 2 }
 0x228   : > { %v1023_v26 = vrot.slane %v1022_v21, 2  ;;  %1102 = vst [vmem:[%s1892_s16] sm:$0xff] %v1092_v7  ;;  %v1034_v60 = vadd.f32 %v1033_v53, %v962_v4  ;;  %v1029_v8 = vrot.slane %v1028_v24, 2 }
 0x229   : > { %v965_v59 = vmul.f32 %v1430_v2, %v948_v45  ;;  %v1018_v14 = vadd.f32 %v1017_v57, %v1016_v40 }
 0x22a   : > { %v1024_v11 = vadd.f32 %v1023_v26, %v1022_v21  ;;  %v1035_v16 = vrot.slane %v1034_v60, 2  ;;  %v1030_v17 = vadd.f32 %v1029_v8, %v1028_v24 }
 0x22b   : > { %v1051_v12 = vrot.slane %v965_v59, 4  ;;  %v1019_v31 = vrot.slane %v1018_v14, 1 }
 0x22c   : > { %v1425_v25 = vpop.eup %1424  ;;  %v1025_v30 = vrot.slane %v1024_v11, 1  ;;  %v1036_v48 = vadd.f32 %v1035_v16, %v1034_v60  ;;  %v1031_v1 = vrot.slane %v1030_v17, 1 }
 0x22d   : > { %v944_v3 = vmul.f32 %v1425_v25, %v1856_v9  ;;  %v1052_v32 = vadd.f32 %v1051_v12, %v965_v59  ;;  %v1020_v63 = vadd.f32 %v1019_v31, %v1018_v14 }
 0x22e   : > { %v1026_v29 = vadd.f32 %v1025_v30, %v1024_v11 }
 0x22f   : > { %v963_v33 = vmul.f32 %v1431_v15, %v944_v3  ;;  %v1053_v22 = vrot.slane %v1052_v32, 2 }
 0x230   : > { %v1093_v41 = vsel %vm1079_vm1, %v1026_v29, %v1020_v63 }
 0x231   : > { %v1039_v34 = vrot.slane %v963_v33, 4  ;;  %v1054_v20 = vadd.f32 %v1053_v22, %v1052_v32 }
 0x232   : > { %v1427_v9 = vpop.eup %1426 }
 0x233   : > { %v1040_v6 = vadd.f32 %v1039_v34, %v963_v33  ;;  %v950_v35 = vmul.f32 %v1427_v9, %v1864_v54  ;;  %v1037_v54 = vrot.slane %v1036_v48, 1  ;;  %v1055_v21 = vrot.slane %v1054_v20, 1 }
 0x234   : > { %v1429_v50 = vpop.eup %1428 }
 0x235   : > { %v1041_v19 = vrot.slane %v1040_v6, 2  ;;  %v946_v23 = vmul.f32 %v1429_v50, %v1866_v39  ;;  %v966_v61 = vmul.f32 %v1432_v49, %v950_v35  ;;  %v1032_v39 = vadd.f32 %v1031_v1, %v1030_v17 }
 0x236   : > { %v1038_v51 = vadd.f32 %v1037_v54, %v1036_v48  ;;  %v1056_v40 = vadd.f32 %v1055_v21, %v1054_v20 }
 0x237   : > { %v964_v13 = vmul.f32 %v1433_v5, %v946_v23  ;;  %v1042_v37 = vadd.f32 %v1041_v19, %v1040_v6  ;;  %v1057_v38 = vrot.slane %v966_v61, 4  ;;  %v1094_v18 = vsel %vm1081_vm2, %v1032_v39, %v1093_v41 }
 0x238   : > { %v1095_v44 = vsel %vm1083_vm3, %v1038_v51, %v1094_v18 }
 0x239   : > { %v1045_v28 = vrot.slane %v964_v13, 4  ;;  %v1058_v43 = vadd.f32 %v1057_v38, %v966_v61  ;;  %v1043_v10 = vrot.slane %v1042_v37, 1 }
 0x23b   : > { %v1046_v47 = vadd.f32 %v1045_v28, %v964_v13  ;;  %v1059_v55 = vrot.slane %v1058_v43, 2  ;;  %v1044_v4 = vadd.f32 %v1043_v10, %v1042_v37 }
 0x23d   : > { %v1047_v36 = vrot.slane %v1046_v47, 2  ;;  %v1060_v42 = vadd.f32 %v1059_v55, %v1058_v43  ;;  %v1096_v58 = vsel %vm1085_vm4, %v1044_v4, %v1095_v44 }
 0x23f   : > { %v1048_v52 = vadd.f32 %v1047_v36, %v1046_v47  ;;  %v1061_v27 = vrot.slane %v1060_v42, 1 }
 0x241   : > { %v1049_v45 = vrot.slane %v1048_v52, 1  ;;  %v1062_v62 = vadd.f32 %v1061_v27, %v1060_v42 }
 0x243   : > { %v1050_v56 = vadd.f32 %v1049_v45, %v1048_v52 }
 0x245   : > { %v1097_v0 = vsel %vm1087_vm5, %v1050_v56, %v1096_v58 }
 0x246   : > { %v1098_v25 = vsel %vm1089_vm6, %v1056_v40, %v1097_v0 }
 0x247   : > { %v1099_v26 = vsel %vm1091_vm7, %v1062_v62, %v1098_v25 }
 0x248   : > { %1103 = vst [vmem:[%s1892_s16 + $0x8] sm:$0xff] %v1099_v26 }
 0x249   : > { %1447 = shalt.err (!%p1444_p3)
}
 0x24a   : > { %s1448_s10 = scalar_lea.hbm %s1907_s30, 256  ;;  %s1452_s13 = scalar_lea.hbm %s1961_s5, 512 }
 0x24b   : > { %p1449_p4 = scmp.ne.s32.totalorder %s1907_s30, %s1448_s10  ;;  %p1453_p9 = scmp.lt.s32.totalorder %s1907_s30, %s1961_s5 }
 0x24c   : > { %p1454_p10 = scmp.lt.s32.totalorder %s1452_s13, %s1448_s10 }
 0x24d   : > { %p1450_p7 = pnand %p1449_p4, %p1569_p5 }
 0x24e   : > { %p1455_p11 = por %p1454_p10, %p1453_p9 }
 0x24f   : > { %p1451_p8 = pneg %p1450_p7 }
 0x251   : > { %p1456_p12 = pnand %p1455_p11, %p1451_p8 }
 0x253   : > { %1459 = shalt.err (!%p1456_p12)
}
 0x254   : > { %s1499_s16 = smov 128   ;;  %s1500_s17 = smov 8  }
 0x255   : > { %1307 = dma.vmem_to_hbm [thread:$0]  (%p1569_p5), %s1909_s23, 256, %s1907_s30, %s1916_s22, %s1499_s16, %s1499_s16, %s1500_s17  }
 0x256 PF: > { %p1313_p13 = scmp.ge.s32.totalorder %s1494_s21, 2  ;;  %s1133_s25 = sand.u32 1, %s1482_s18  }
 0x257   : > { %s1134_s26 = scalar_lea.sflag [#allocation4], %s1133_s25 }
 0x258   : > { %p1310_p0 = pnand %p1313_p13, %p1573_p6 }
 0x25a   : > { %p1311_p1 = pneg %p1310_p0 }
 0x25c   : > { %1477 = dma.done.wait (%p1311_p1), %s1134_s26, 256  }
 0x25d   : > { %1479 = vsyncadd (%p1311_p1), %s1134_s26, 4294967040  ;;  %p15_p2 = scmp.ge.s32.totalorder %s1556_s24, 4   ;;  %s1964_s18 = smov %s1486_s19 }
 0x25e   : > { %s1965_s19 = smov %s1490_s20  ;;  %s1966_s20 = smov %s1567_s27 }
 0x25f   : > { %s1967_s21 = smov %s1556_s24  ;;  %17 = sbr.rel (!%p15_p2) target bundleno = 3 (0x3), region = 75 }
 0x264   :  { %1139 = vsyncpa [#allocation4], 1 }
 0x265   :  { %1141 = vsyncpa [#allocation4 + $0x1], 1 }

</bundles_post_ra>
